<compile_context>
chip_gen: v7x
topology: tpu7x:2x2x1
jax: 0.10.0
libtpu: 0.0.40
codegen_flags: <defaults>
</compile_context>

<pallas_src>
import functools

import jax
import jax.numpy as jnp
from jax.experimental import pallas as pl
from jax.experimental.pallas import tpu as pltpu


def _downsample_kernel(x_ref, w_ref, b_ref, o_ref, *, C, WO, T):
    """One (batch, row-tile) step of the strided 3x3 conv.

    x_ref: (1, 1, 6*C, T + WO) bf16 tap-plane slab, T = tile_ho * WO.
           groups 0..2: even padded rows (taps dy in {0, 2}), cols {2j, 2j+1, 2j+2}
           groups 3..5: odd  padded rows (tap  dy == 1),      cols {2j, 2j+1, 2j+2}
           lane n = r*WO + j; the last WO lanes are the tile's halo row.
    w_ref: (9, C, C) bf16, per-tap (co, ci) weight matrices, tap = dy*3 + dx.
    b_ref: (C, 1) f32 bias.
    o_ref: (1, C, T) f32 output block; lane n = r*WO + j.
    """
    acc = None
    for dy in range(3):
        for dx in range(3):
            tap = dy * 3 + dx
            g = (3 if dy == 1 else 0) + dx      # tap-plane group for this tap
            off = WO if dy == 2 else 0          # dy == 2 reads rows shifted by one
            # Contiguous (C, T) slice straight from the ref -> feeds the MXU
            # directly (no concat, no reshape, no full-block materialization).
            x_tap = x_ref[0, 0, g * C:(g + 1) * C, off:off + T]
            p = jnp.dot(w_ref[tap], x_tap, preferred_element_type=jnp.float32)
            acc = p if acc is None else acc + p
    o_ref[0] = (acc + b_ref[...]).astype(o_ref.dtype)


def _pick_tile_ho(C, HO, WO, vmem_block_budget):
    """Largest tile_ho dividing HO whose double-buffered blocks fit the budget
    and whose output lane width tile_ho*WO is a multiple of 128 (lane-dense
    stores), falling back to the whole image (tile_ho == HO)."""
    def block_bytes(th):
        t = th * WO
        slab = 6 * C * (t + WO) * 2          # bf16 input slab
        out = C * t * 4                      # f32 output block
        wgt = 9 * C * C * 2 + C * 4          # resident weights + bias
        return 2 * slab + 2 * out + wgt      # x2 for double buffering
    cands = [t for t in range(1, HO + 1)
             if HO % t == 0 and ((t * WO) % 128 == 0 or t == HO)]
    fitting = [t for t in cands if block_bytes(t) <= vmem_block_budget]
    return max(fitting) if fitting else min(cands)


def _build_tap_planes(x, tile_ho, compute_dtype):
    """Stride-2 parity split of the pad-1 input into six lane-dense tap-plane
    groups, packed per row-tile together with that tile's one halo row.

    Returns (B, NT, 6*C, (tile_ho+1)*WO) where element [b, t, g*C + c, r*WO + j]
    equals xpad[b, c, 2*(t*tile_ho + r) + (1 if g >= 3 else 0), 2*j + (g % 3)].
    """
    B, C, H, W = x.shape
    HO, WO = H // 2, W // 2
    NT = HO // tile_ho
    x = x.astype(compute_dtype)
    # Row-parity planes of the zero-padded (pad=1) input, each (B, C, HO+1, W):
    #   p0[:, :, i, :] = xpad[:, :, 2*i,   :]  (rows: 0-pad, x1, x3, ..., x_{H-1})
    #   p1[:, :, i, :] = xpad[:, :, 2*i+1, :]  (rows: x0, x2, ..., x_{H-2}, unused pad)
    p0 = jnp.pad(x[:, :, 1::2, :], ((0, 0), (0, 0), (1, 0), (0, 0)))
    p1 = jnp.pad(x[:, :, 0::2, :], ((0, 0), (0, 0), (0, 1), (0, 0)))
    groups = []
    for p in (p0, p1):
        m = p[..., 0::2]                                              # xpad col 2j+1 (dx=1)
        r = p[..., 1::2]                                              # xpad col 2j+2 (dx=2)
        l = jnp.pad(r[..., :-1], ((0, 0), (0, 0), (0, 0), (1, 0)))    # xpad col 2j   (dx=0)
        groups += [l, m, r]
    planes = jnp.stack(groups, axis=1)                                # (B, 6, C, HO+1, WO)
    # Pack per row-tile, duplicating each tile's single halo row (row (t+1)*tile_ho)
    # so every tap is a contiguous slice inside the kernel (no cross-step halos).
    main = planes[:, :, :, :HO, :].reshape(B, 6, C, NT, tile_ho, WO)
    halo = planes[:, :, :, tile_ho::tile_ho, :][:, :, :, :, None, :]  # (B,6,C,NT,1,WO)
    slab = jnp.concatenate([main, halo], axis=4)                      # (B,6,C,NT,tile_ho+1,WO)
    return slab.transpose(0, 3, 1, 2, 4, 5).reshape(
        B, NT, 6 * C, (tile_ho + 1) * WO)


def downsample_forward(x, w, b, *, tile_ho=None, compute_dtype=jnp.bfloat16,
                       vmem_block_budget=20 * 1024 * 1024,
                       vmem_limit_bytes=40 * 1024 * 1024):
    """x: (B, C, H, W) NCHW f32, w: (C, C, 3, 3) OIHW, b: (C,).
    Returns conv2d(x, w, stride=2, padding=1) + b  ->  (B, C, H//2, W//2) f32."""
    B, C, H, W = x.shape
    # TODO(synk): odd spatial sizes not handled (stride-2 parity split assumes even H, W).
    assert H % 2 == 0 and W % 2 == 0, (H, W)
    HO, WO = H // 2, W // 2
    if tile_ho is None:
        tile_ho = _pick_tile_ho(C, HO, WO, vmem_block_budget)
    assert HO % tile_ho == 0, (HO, tile_ho)
    NT = HO // tile_ho
    T = tile_ho * WO
    # Lane-dense output stores (biggest single lever per the review): the output
    # block's last dim must be a multiple of 128 (or the whole image).
    assert T % 128 == 0 or tile_ho == HO, (tile_ho, WO)

    # One fused XLA packing pass (acknowledged cost: read x once, write ~0.75x of
    # the f32 input bytes as bf16 tap planes).  Replaces the old pad + 6D transpose.
    xq = _build_tap_planes(x, tile_ho, compute_dtype)           # (B, NT, 6C, T+WO)
    # Per-tap (co, ci) weight matrices, tap = dy*3 + dx; resident across the grid.
    w9 = jnp.transpose(w, (2, 3, 0, 1)).reshape(9, C, C).astype(compute_dtype)
    b_col = b.reshape(C, 1).astype(jnp.float32)

    out_flat = pl.pallas_call(
        functools.partial(_downsample_kernel, C=C, WO=WO, T=T),
        out_shape=jax.ShapeDtypeStruct((B, C, HO * WO), jnp.float32),
        grid=(B, NT),
        in_specs=[
            pl.BlockSpec((1, 1, 6 * C, T + WO), lambda bi, ti: (bi, ti, 0, 0)),
            pl.BlockSpec((9, C, C), lambda bi, ti: (0, 0, 0)),   # resident weights
            pl.BlockSpec((C, 1), lambda bi, ti: (0, 0)),         # resident bias
        ],
        out_specs=pl.BlockSpec((1, C, T), lambda bi, ti: (bi, 0, ti)),
        compiler_params=pltpu.CompilerParams(
            dimension_semantics=("parallel", "parallel"),
            vmem_limit_bytes=vmem_limit_bytes),
    )(xq, w9, b_col)

    return out_flat.reshape(B, C, HO, WO)                        # already NCHW


if __name__ == "__main__":
    key = jax.random.PRNGKey(0)
    B, C, H, W = 2, 4, 32, 32
    kx, kw, kb = jax.random.split(key, 3)
    x = jax.random.normal(kx, (B, C, H, W), jnp.float32)
    w = jax.random.normal(kw, (C, C, 3, 3), jnp.float32) * 0.1   # downsample.weight
    b = jax.random.normal(kb, (C,), jnp.float32) * 0.1           # downsample.bias

    # tile_ho=8 -> 2 row-tiles per image: exercises the spatial grid axis and the
    # per-tile halo row, with a lane-dense (128-wide) output block.
    out = jax.block_until_ready(downsample_forward(x, w, b, tile_ho=8))
    assert out.shape == (B, C, H // 2, W // 2), out.shape
    assert bool(jnp.all(jnp.isfinite(out)))

    conv = functools.partial(
        jax.lax.conv_general_dilated, window_strides=(2, 2),
        padding=((1, 1), (1, 1)), dimension_numbers=("NCHW", "OIHW", "NCHW"),
        precision=jax.lax.Precision.HIGHEST)

    # Reference 1: identical bf16-rounded inputs, f32 accumulation (tight tol).
    x_bf = x.astype(jnp.bfloat16).astype(jnp.float32)
    w_bf = w.astype(jnp.bfloat16).astype(jnp.float32)
    ref_bf16 = conv(x_bf, w_bf) + b.reshape(1, C, 1, 1)
    err = float(jnp.max(jnp.abs(out - ref_bf16)))
    assert bool(jnp.allclose(out, ref_bf16, atol=1e-4, rtol=1e-4)), err

    # Reference 2: full-f32 conv (loose tol: only bf16 input rounding differs).
    ref_f32 = conv(x, w) + b.reshape(1, C, 1, 1)
    err32 = float(jnp.max(jnp.abs(out - ref_f32)))
    assert bool(jnp.allclose(out, ref_f32, atol=3e-2, rtol=3e-2)), err32

    print("KERNEL_OK")
</pallas_src>

<mosaic_0001>
module attributes {stable_mosaic.version = 11 : i64} {
  func.func @_downsample_kernel(%arg0: i32, %arg1: i32, %arg2: memref<1x1x24x144xbf16, #tpu.memory_space<vmem>>, %arg3: memref<9x4x4xbf16, #tpu.memory_space<vmem>>, %arg4: memref<4x1xf32, #tpu.memory_space<vmem>>, %arg5: memref<1x4x128xf32, #tpu.memory_space<vmem>>) attributes {dimension_semantics = [#tpu.dimension_semantics<parallel>, #tpu.dimension_semantics<parallel>], iteration_bounds = array<i64: 2, 2>, scalar_prefetch = 0 : i64, scratch_operands = 0 : i64, tpu.core_type = #tpu.core_type<tc>, window_params = [{transform_indices = @transform_0, window_bounds = array<i64: 1, 1, 24, 144>}, {pipeline_mode = #tpu.pipeline_mode<synchronous>, transform_indices = @transform_1, window_bounds = array<i64: 9, 4, 4>}, {pipeline_mode = #tpu.pipeline_mode<synchronous>, transform_indices = @transform_2, window_bounds = array<i64: 4, 1>}, {transform_indices = @transform_3, window_bounds = array<i64: 1, 4, 128>}]} {
    %c0 = arith.constant 0 : index
    %c0_0 = arith.constant 0 : index
    %c0_1 = arith.constant 0 : index
    %c0_2 = arith.constant 0 : index
    %0 = vector.load %arg2[%c0, %c0_0, %c0_1, %c0_2] : memref<1x1x24x144xbf16, #tpu.memory_space<vmem>>, vector<1x1x4x128xbf16>
    %1 = vector.shape_cast %0 : vector<1x1x4x128xbf16> to vector<4x128xbf16>
    %c0_3 = arith.constant 0 : index
    %c0_4 = arith.constant 0 : index
    %c0_5 = arith.constant 0 : index
    %2 = vector.load %arg3[%c0_3, %c0_4, %c0_5] : memref<9x4x4xbf16, #tpu.memory_space<vmem>>, vector<1x4x4xbf16>
    %3 = vector.shape_cast %2 : vector<1x4x4xbf16> to vector<4x4xbf16>
    %cst = arith.constant dense<0.000000e+00> : vector<4x128xf32>
    %4 = tpu.matmul %3, %1, %cst {dimension_numbers = #tpu.dot_dimension_numbers<[1], [0], [0], [1], [0, 0, 1, 1], [], []>} : vector<4x4xbf16>, vector<4x128xbf16>, vector<4x128xf32> -> vector<4x128xf32>
    %c0_6 = arith.constant 0 : index
    %c0_7 = arith.constant 0 : index
    %c4 = arith.constant 4 : index
    %c0_8 = arith.constant 0 : index
    %5 = vector.load %arg2[%c0_6, %c0_7, %c4, %c0_8] : memref<1x1x24x144xbf16, #tpu.memory_space<vmem>>, vector<1x1x4x128xbf16>
    %6 = vector.shape_cast %5 : vector<1x1x4x128xbf16> to vector<4x128xbf16>
    %c1 = arith.constant 1 : index
    %c0_9 = arith.constant 0 : index
    %c0_10 = arith.constant 0 : index
    %7 = vector.load %arg3[%c1, %c0_9, %c0_10] : memref<9x4x4xbf16, #tpu.memory_space<vmem>>, vector<1x4x4xbf16>
    %8 = vector.shape_cast %7 : vector<1x4x4xbf16> to vector<4x4xbf16>
    %cst_11 = arith.constant dense<0.000000e+00> : vector<4x128xf32>
    %9 = tpu.matmul %8, %6, %cst_11 {dimension_numbers = #tpu.dot_dimension_numbers<[1], [0], [0], [1], [0, 0, 1, 1], [], []>} : vector<4x4xbf16>, vector<4x128xbf16>, vector<4x128xf32> -> vector<4x128xf32>
    %10 = arith.addf %4, %9 : vector<4x128xf32>
    %c0_12 = arith.constant 0 : index
    %c0_13 = arith.constant 0 : index
    %c8 = arith.constant 8 : index
    %c0_14 = arith.constant 0 : index
    %11 = vector.load %arg2[%c0_12, %c0_13, %c8, %c0_14] : memref<1x1x24x144xbf16, #tpu.memory_space<vmem>>, vector<1x1x4x128xbf16>
    %12 = vector.shape_cast %11 : vector<1x1x4x128xbf16> to vector<4x128xbf16>
    %c2 = arith.constant 2 : index
    %c0_15 = arith.constant 0 : index
    %c0_16 = arith.constant 0 : index
    %13 = vector.load %arg3[%c2, %c0_15, %c0_16] : memref<9x4x4xbf16, #tpu.memory_space<vmem>>, vector<1x4x4xbf16>
    %14 = vector.shape_cast %13 : vector<1x4x4xbf16> to vector<4x4xbf16>
    %cst_17 = arith.constant dense<0.000000e+00> : vector<4x128xf32>
    %15 = tpu.matmul %14, %12, %cst_17 {dimension_numbers = #tpu.dot_dimension_numbers<[1], [0], [0], [1], [0, 0, 1, 1], [], []>} : vector<4x4xbf16>, vector<4x128xbf16>, vector<4x128xf32> -> vector<4x128xf32>
    %16 = arith.addf %10, %15 : vector<4x128xf32>
    %c0_18 = arith.constant 0 : index
    %c0_19 = arith.constant 0 : index
    %c12 = arith.constant 12 : index
    %c0_20 = arith.constant 0 : index
    %17 = vector.load %arg2[%c0_18, %c0_19, %c12, %c0_20] : memref<1x1x24x144xbf16, #tpu.memory_space<vmem>>, vector<1x1x4x128xbf16>
    %18 = vector.shape_cast %17 : vector<1x1x4x128xbf16> to vector<4x128xbf16>
    %c3 = arith.constant 3 : index
    %c0_21 = arith.constant 0 : index
    %c0_22 = arith.constant 0 : index
    %19 = vector.load %arg3[%c3, %c0_21, %c0_22] : memref<9x4x4xbf16, #tpu.memory_space<vmem>>, vector<1x4x4xbf16>
    %20 = vector.shape_cast %19 : vector<1x4x4xbf16> to vector<4x4xbf16>
    %cst_23 = arith.constant dense<0.000000e+00> : vector<4x128xf32>
    %21 = tpu.matmul %20, %18, %cst_23 {dimension_numbers = #tpu.dot_dimension_numbers<[1], [0], [0], [1], [0, 0, 1, 1], [], []>} : vector<4x4xbf16>, vector<4x128xbf16>, vector<4x128xf32> -> vector<4x128xf32>
    %22 = arith.addf %16, %21 : vector<4x128xf32>
    %c0_24 = arith.constant 0 : index
    %c0_25 = arith.constant 0 : index
    %c16 = arith.constant 16 : index
    %c0_26 = arith.constant 0 : index
    %23 = vector.load %arg2[%c0_24, %c0_25, %c16, %c0_26] : memref<1x1x24x144xbf16, #tpu.memory_space<vmem>>, vector<1x1x4x128xbf16>
    %24 = vector.shape_cast %23 : vector<1x1x4x128xbf16> to vector<4x128xbf16>
    %c4_27 = arith.constant 4 : index
    %c0_28 = arith.constant 0 : index
    %c0_29 = arith.constant 0 : index
    %25 = vector.load %arg3[%c4_27, %c0_28, %c0_29] : memref<9x4x4xbf16, #tpu.memory_space<vmem>>, vector<1x4x4xbf16>
    %26 = vector.shape_cast %25 : vector<1x4x4xbf16> to vector<4x4xbf16>
    %cst_30 = arith.constant dense<0.000000e+00> : vector<4x128xf32>
    %27 = tpu.matmul %26, %24, %cst_30 {dimension_numbers = #tpu.dot_dimension_numbers<[1], [0], [0], [1], [0, 0, 1, 1], [], []>} : vector<4x4xbf16>, vector<4x128xbf16>, vector<4x128xf32> -> vector<4x128xf32>
    %28 = arith.addf %22, %27 : vector<4x128xf32>
    %c0_31 = arith.constant 0 : index
    %c0_32 = arith.constant 0 : index
    %c20 = arith.constant 20 : index
    %c0_33 = arith.constant 0 : index
    %29 = vector.load %arg2[%c0_31, %c0_32, %c20, %c0_33] : memref<1x1x24x144xbf16, #tpu.memory_space<vmem>>, vector<1x1x4x128xbf16>
    %30 = vector.shape_cast %29 : vector<1x1x4x128xbf16> to vector<4x128xbf16>
    %c5 = arith.constant 5 : index
    %c0_34 = arith.constant 0 : index
    %c0_35 = arith.constant 0 : index
    %31 = vector.load %arg3[%c5, %c0_34, %c0_35] : memref<9x4x4xbf16, #tpu.memory_space<vmem>>, vector<1x4x4xbf16>
    %32 = vector.shape_cast %31 : vector<1x4x4xbf16> to vector<4x4xbf16>
    %cst_36 = arith.constant dense<0.000000e+00> : vector<4x128xf32>
    %33 = tpu.matmul %32, %30, %cst_36 {dimension_numbers = #tpu.dot_dimension_numbers<[1], [0], [0], [1], [0, 0, 1, 1], [], []>} : vector<4x4xbf16>, vector<4x128xbf16>, vector<4x128xf32> -> vector<4x128xf32>
    %34 = arith.addf %28, %33 : vector<4x128xf32>
    %c0_37 = arith.constant 0 : index
    %c0_38 = arith.constant 0 : index
    %c0_39 = arith.constant 0 : index
    %c16_40 = arith.constant 16 : index
    %35 = vector.load %arg2[%c0_37, %c0_38, %c0_39, %c16_40] : memref<1x1x24x144xbf16, #tpu.memory_space<vmem>>, vector<1x1x4x128xbf16>
    %36 = vector.shape_cast %35 : vector<1x1x4x128xbf16> to vector<4x128xbf16>
    %c6 = arith.constant 6 : index
    %c0_41 = arith.constant 0 : index
    %c0_42 = arith.constant 0 : index
    %37 = vector.load %arg3[%c6, %c0_41, %c0_42] : memref<9x4x4xbf16, #tpu.memory_space<vmem>>, vector<1x4x4xbf16>
    %38 = vector.shape_cast %37 : vector<1x4x4xbf16> to vector<4x4xbf16>
    %cst_43 = arith.constant dense<0.000000e+00> : vector<4x128xf32>
    %39 = tpu.matmul %38, %36, %cst_43 {dimension_numbers = #tpu.dot_dimension_numbers<[1], [0], [0], [1], [0, 0, 1, 1], [], []>} : vector<4x4xbf16>, vector<4x128xbf16>, vector<4x128xf32> -> vector<4x128xf32>
    %40 = arith.addf %34, %39 : vector<4x128xf32>
    %c0_44 = arith.constant 0 : index
    %c0_45 = arith.constant 0 : index
    %c4_46 = arith.constant 4 : index
    %c16_47 = arith.constant 16 : index
    %41 = vector.load %arg2[%c0_44, %c0_45, %c4_46, %c16_47] : memref<1x1x24x144xbf16, #tpu.memory_space<vmem>>, vector<1x1x4x128xbf16>
    %42 = vector.shape_cast %41 : vector<1x1x4x128xbf16> to vector<4x128xbf16>
    %c7 = arith.constant 7 : index
    %c0_48 = arith.constant 0 : index
    %c0_49 = arith.constant 0 : index
    %43 = vector.load %arg3[%c7, %c0_48, %c0_49] : memref<9x4x4xbf16, #tpu.memory_space<vmem>>, vector<1x4x4xbf16>
    %44 = vector.shape_cast %43 : vector<1x4x4xbf16> to vector<4x4xbf16>
    %cst_50 = arith.constant dense<0.000000e+00> : vector<4x128xf32>
    %45 = tpu.matmul %44, %42, %cst_50 {dimension_numbers = #tpu.dot_dimension_numbers<[1], [0], [0], [1], [0, 0, 1, 1], [], []>} : vector<4x4xbf16>, vector<4x128xbf16>, vector<4x128xf32> -> vector<4x128xf32>
    %46 = arith.addf %40, %45 : vector<4x128xf32>
    %c0_51 = arith.constant 0 : index
    %c0_52 = arith.constant 0 : index
    %c8_53 = arith.constant 8 : index
    %c16_54 = arith.constant 16 : index
    %47 = vector.load %arg2[%c0_51, %c0_52, %c8_53, %c16_54] : memref<1x1x24x144xbf16, #tpu.memory_space<vmem>>, vector<1x1x4x128xbf16>
    %48 = vector.shape_cast %47 : vector<1x1x4x128xbf16> to vector<4x128xbf16>
    %c8_55 = arith.constant 8 : index
    %c0_56 = arith.constant 0 : index
    %c0_57 = arith.constant 0 : index
    %49 = vector.load %arg3[%c8_55, %c0_56, %c0_57] : memref<9x4x4xbf16, #tpu.memory_space<vmem>>, vector<1x4x4xbf16>
    %50 = vector.shape_cast %49 : vector<1x4x4xbf16> to vector<4x4xbf16>
    %cst_58 = arith.constant dense<0.000000e+00> : vector<4x128xf32>
    %51 = tpu.matmul %50, %48, %cst_58 {dimension_numbers = #tpu.dot_dimension_numbers<[1], [0], [0], [1], [0, 0, 1, 1], [], []>} : vector<4x4xbf16>, vector<4x128xbf16>, vector<4x128xf32> -> vector<4x128xf32>
    %52 = arith.addf %46, %51 : vector<4x128xf32>
    %c0_59 = arith.constant 0 : index
    %c0_60 = arith.constant 0 : index
    %53 = vector.load %arg4[%c0_59, %c0_60] : memref<4x1xf32, #tpu.memory_space<vmem>>, vector<4x1xf32>
    %54 = vector.broadcast %53 : vector<4x1xf32> to vector<4x128xf32>
    %55 = arith.addf %52, %54 : vector<4x128xf32>
    %c0_61 = arith.constant 0 : index
    %c0_62 = arith.constant 0 : index
    %c0_63 = arith.constant 0 : index
    %56 = vector.load %arg5[%c0_61, %c0_62, %c0_63] : memref<1x4x128xf32, #tpu.memory_space<vmem>>, vector<1x4x128xf32>
    %57 = vector.shape_cast %56 : vector<1x4x128xf32> to vector<4x128xf32>
    %58 = vector.shape_cast %55 : vector<4x128xf32> to vector<1x4x128xf32>
    tpu.vector_store %arg5[%c0_61, %c0_62, %c0_63], %58 {strides = array<i32>} : memref<1x4x128xf32, #tpu.memory_space<vmem>>, vector<1x4x128xf32>,
    return
  }
  func.func @transform_0(%arg0: i32, %arg1: i32) -> (i32, i32, i32, i32) {
    %c0_i32 = arith.constant 0 : i32
    %c0_i32_0 = arith.constant 0 : i32
    %c0_i32_1 = arith.constant 0 : i32
    return %arg0, %arg1, %c0_i32, %c0_i32_0 : i32, i32, i32, i32
  }
  func.func @transform_1(%arg0: i32, %arg1: i32) -> (i32, i32, i32) {
    %c0_i32 = arith.constant 0 : i32
    %c0_i32_0 = arith.constant 0 : i32
    %c0_i32_1 = arith.constant 0 : i32
    %c0_i32_2 = arith.constant 0 : i32
    return %c0_i32, %c0_i32_0, %c0_i32_1 : i32, i32, i32
  }
  func.func @transform_2(%arg0: i32, %arg1: i32) -> (i32, i32) {
    %c0_i32 = arith.constant 0 : i32
    %c0_i32_0 = arith.constant 0 : i32
    %c0_i32_1 = arith.constant 0 : i32
    return %c0_i32, %c0_i32_0 : i32, i32
  }
  func.func @transform_3(%arg0: i32, %arg1: i32) -> (i32, i32, i32) {
    %c0_i32 = arith.constant 0 : i32
    %c0_i32_0 = arith.constant 0 : i32
    return %arg0, %c0_i32, %arg1 : i32, i32, i32
  }
}

</mosaic_0001>

<bundles_post_ra>
// kernel: tpu_custom_call.1
= control target key start
LH: loop header
LB: loop body
LE: loop exit
PB: predicated region body
PF: predicated region fallthrough
CT: control target
= control target key end

     0   :  { %8 = vsyncpa [#allocation3], 0  ;;  %s1464_s0 = inlined_call_operand.hbm [shape: bf16[2,2,24,144], index: 0, kind: input, shape index: {}]   ;;  %s1465_s1 = inlined_call_operand.vmem [shape: bf16[9,4,4], index: 1, kind: input, shape index: {}]   ;;  %s1466_s2 = inlined_call_operand.vmem [shape: f32[4,1], index: 2, kind: input, shape index: {}]   ;;  %s1467_s3 = inlined_call_operand.hbm [shape: f32[2,4,256], index: 3, kind: output, shape index: {}]  }
   0x1   :  { %10 = vsyncpa [#allocation3 + $0x1], 0 }
   0x2   :  { %11 = vsyncpa [#allocation4], 0 }
   0x3   :  { %13 = vsyncpa [#allocation4 + $0x1], 0  ;;  %s1178_s12 = smov 0   ;;  %s1180_s13 = smov 0  }
   0x4   :  { %s1182_s14 = smov 0   ;;  %s1184_s15 = smov 0  }
   0x5   :  { %s1186_s16 = smov 0   ;;  %s1188_s17 = smov 0  }
   0x6   :  { %s1190_s18 = smov 0   ;;  %s1192_s19 = smov 0  }
   0x7 LB: > { %s812_s20 = sadd.s32 4294967295, %s1148_s19   ;;  %s813_s21 = sadd.s32 4294967294, %s1148_s19   ;;  %s1148_s19 = sphi %s1192_s19, %s19_s19   ;;  %s1144_s18 = sphi %s1190_s18, %s1485_s18   ;;  %s1140_s17 = sphi %s1188_s17, %s1484_s17   ;;  %s1136_s16 = sphi %s1186_s16, %s1483_s16   ;;  %s1132_s15 = sphi %s1184_s15, %s1482_s15   ;;  %s1128_s14 = sphi %s1182_s14, %s1481_s14   ;;  %s1124_s13 = sphi %s1180_s13, %s1480_s13   ;;  %s1120_s12 = sphi %s1178_s12, %s1479_s12  }
   0x8   : > { %s28_s22 = sadd.s32 1, %s1140_s17  ;;  %s31_s23 = sadd.s32 1, %s1144_s18 }
   0x9   : > { %p29_p0 = scmp.ge.s32.totalorder %s28_s22, 2  ;;  %s40_s24 = sadd.s32 1, %s1128_s14 }
   0xa   : > { %p47_p1 = scmp.ne.s32.totalorder %s1128_s14, %s1124_s13  ;;  %p48_p2 = scmp.eq.s32.totalorder %s1148_s19, 0 }
   0xb   : > { %s1487_s22 = smov (%p29_p0, %s28_s22), 0  ;;  %s1489_s23 = smov (!%p29_p0, %s31_s23), %s1144_s18 }
   0xc   : > { %s36_s25 = ssub.s32 %s1140_s17, %s1487_s22  ;;  %p1231_p3 = por %p48_p2, %p47_p1 }
   0xd   : > { %p33_p4 = scmp.ge.s32.totalorder %s1489_s23, 2  ;;  %p53_p5 = scmp.ne.s32.totalorder %s1124_s13, %s1120_s12 }
   0xe   : > { %p54_p6 = scmp.eq.s32.totalorder %s812_s20, 0  ;;  %p121_p7 = scmp.eq.s32.totalorder %s812_s20, 3 }
   0xf   : > { %s1491_s23 = smov (%p33_p4, %s1489_s23), 0  ;;  %p127_p10 = scmp.eq.s32.totalorder %s813_s21, 3 }
  0x10   : > { %1471 = sst [smem:[#allocation8_spill]] %s1491_s23  ;;  %p1239_p8 = por %p54_p6, %p53_p5 }
  0x11   : > { %p1243_p9 = por %p121_p7, %p47_p1  ;;  %s35_s29 = ssub.s32 %s1144_s18, %s1491_s23 }
  0x12   : > { %s37_s30 = sor.u32 %s36_s25, %s35_s29  ;;  %p1249_p12 = por %p127_p10, %p53_p5 }
  0x13   : > { %s1473_s28 = scalar_select %p1243_p9, 1, 0 }
  0x14   : > { %p38_p11 = scmp.eq.s32.totalorder %s37_s30, 0  ;;  %p938_p13 = scmp.lt.s32.totalorder %s1148_s19, 4 }
  0x15   : > { %s1474_s4 = scalar_select %p1249_p12, 1, 0 }
  0x16   : > { %s153_s5 = sand.u32 1, %s1128_s14   ;;  %s923_s8 = smul.u32 6, %s1140_s17 }
  0x17   : > { %s1256_s6 = scalar_select %p38_p11, %s1128_s14, %s40_s24  }
  0x18   : > { %s922_s7 = smul.u32 24, %s153_s5  ;;  %p1261_p0 = pnand %p938_p13, %p1231_p3 }
  0x19   : > { %s924_s10 = smul.u32 12, %s1144_s18  ;;  %s1273_s26 = scalar_lea.sflag [#allocation3], %s153_s5 }
  0x1a   : > { %s157_s11 = scalar_lea.vmem [#allocation2], %s922_s7  ;;  %p1022_p2 = pneg %p1261_p0 }
  0x1b   : > { %s166_s20 = sshll.u32 %s157_s11, 4  ;;  %s163_s21 = sadd.s32 %s924_s10, %s923_s8  ;;  %s1266_s20 = int_to_ptr.vmem [resolvable:$true] %s166_s20 }
  0x1c   : > { %s816_s25 = sshll.u32 %s163_s21, 6  ;;  %s1025_s10 = scalar_lea.hbm %s1464_s0, 1536 }
  0x1d   : > { %s1271_s24 = scalar_lea.hbm %s1464_s0, %s816_s25 }
  0x1e   : > { %s1020_s23 = scalar_lea.hbm %s1271_s24, 384  ;;  %p1026_p5 = scmp.lt.u32.totalorder %s1271_s24, %s1464_s0 }
  0x1f   : > { %p1021_p1 = scmp.ne.s32.totalorder %s1271_s24, %s1020_s23  ;;  %p1027_p6 = scmp.lt.u32.totalorder %s1025_s10, %s1020_s23 }
  0x20   : > { %p1029_p10 = scmp.lt.u32.totalorder %s1020_s23, %s1271_s24 }
  0x21   : > { %p1023_p3 = pnand %p1022_p2, %p1021_p1  ;;  %p1028_p7 = por %p1027_p6, %p1026_p5 }
  0x23   : > { %p1024_p4 = pneg %p1023_p3  ;;  %p1030_p11 = por %p1029_p10, %p1028_p7 }
  0x25   : > { %p1031_p13 = pnand %p1030_p11, %p1024_p4 }
  0x27   : > { %1034 = shalt.err (!%p1031_p13)
}
  0x28   : > { %s1035_s5 = scalar_lea.vmem %s1266_s20, 384  ;;  %s1150_s25 = smov [#allocation2]  }
  0x29   : > { %p1036_p1 = scmp.ne.s32.totalorder %s1266_s20, %s1035_s5  ;;  %s1040_s29 = sshll.u32 %s1150_s25, 4  ;;  %s1041_s29 = int_to_ptr.vmem [resolvable:$false] %s1040_s29 }
  0x2a   : > { %s1042_s30 = scalar_lea.vmem %s1041_s29, 768  ;;  %p1043_p9 = scmp.lt.s32.totalorder %s1266_s20, %s1041_s29 }
  0x2b   : > { %p1038_p3 = pnand %p1036_p1, %p1022_p2  ;;  %p1044_p5 = scmp.lt.s32.totalorder %s1042_s30, %s1035_s5 }
  0x2d   : > { %p1039_p12 = pneg %p1038_p3  ;;  %p1045_p6 = por %p1044_p5, %p1043_p9 }
  0x2f   : > { %p1046_p7 = pnand %p1045_p6, %p1039_p12 }
  0x31   : > { %1049 = shalt.err (!%p1046_p7)
}
  0x32   : > { %s1151_s23 = smov 128   ;;  %s1152_s7 = smov 8  }
  0x33   : > { %933 = dma.hbm_to_vmem [thread:$0]  (!%p1261_p0), %s1271_s24, 384, %s1266_s20, %s1273_s26, %s1151_s23, %s1151_s23, %s1152_s7  }
  0x34   : > { %p817_p2 = scmp.ge.s32.totalorder %s1148_s19, 1  ;;  %p174_p4 = scmp.lt.s32.totalorder %s1148_s19, 5 }
  0x36   : > { %p175_p10 = pnand %p817_p2, %p174_p4 }
  0x37   : > { %s1304_s8 = sand.u32 (!%p175_p10), 1, %s1124_s13  }
  0x38   : > { %178 = sbr.rel (%p175_p10) target bundleno = 429 (0x1ad), region = 32  ;;  %s181_s11 = scalar_lea.sflag (!%p175_p10), [#allocation3], %s1304_s8 }
  0x39   : > { %s925_s10 = smul.u32 (!%p175_p10), 24, %s1304_s8 }
  0x3b   : > { %s1308_s21 = scalar_lea.vmem (!%p175_p10), [#allocation2], %s925_s10 }
  0x3f   : > { %1111 = dma.done.wait (%p1239_p8), %s181_s11, 384  }
  0x40   : > { %1113 = vsyncadd (%p1239_p8), %s181_s11, 4294966912  ;;  %v1153_v0 = vmov 0.0   ;;  %vm1154_vm0 = vmmov 0   ;;  %v519_v1 = vld [vmem:[%s1308_s21] sm:$0x33]  ;;  %vm221_vm1 = vcmask 1041408  }
  0x41   : > { %868 = vmatprep.subr.bf16.mxu0 %v1153_v0  ;;  %874 = vmatprep.subr.bf16.mxu1 %v1153_v0  ;;  %v580_v2 = vld [vmem:[%s1308_s21] sm:$0xcc]  ;;  %v834_v3 = vcombine.low %v519_v1, %v519_v1  ;;  %v1017_v6 = vld [vmem:[%s1308_s21] ss:$0 sps:$4 sm:$0xcc]   ;;  %v835_v10 = vcombine.high %v519_v1, %v519_v1  ;;  %s1155_s20 = smov 112  }
  0x42   : > { %870 = vmatprep.mubr.msk.bf16.mxu0 %vm1154_vm0, %v1153_v0  ;;  %876 = vmatprep.mubr.msk.bf16.mxu1 %vm1154_vm0, %v1153_v0  ;;  %v838_v4 = vcombine.low %v580_v2, %v580_v2  ;;  %v839_v5 = vcombine.high %v580_v2, %v580_v2  ;;  %v642_v7 = vld [vmem:[%s1308_s21 + $0x8] sm:$0x33]  ;;  %v208_v8 = vld [vmem:[%s1308_s21] sm:$0x3]  ;;  %v216_v12 = vrot.slane %v1017_v6, 2  ;;  %vm217_vm2 = vcmask 31744  }
  0x43   : > { %v209_v9 = vld [vmem:[%s1465_s1] sm:$0x3]  ;;  %527 = vrot.lane.b32.xlu0 %v834_v3, %s1155_s20  ;;  %v269_v13 = vsel %vm221_vm1, %v208_v8, 0  ;;  %v819_v18 = vld [vmem:[%s1465_s1 + $0x2] sm:$0x3]  ;;  %v842_v20 = vcombine.low %v642_v7, %v642_v7  ;;  %v843_v24 = vcombine.high %v642_v7, %v642_v7  ;;  %v1156_v30 = vmov 0  }
  0x44   : > { %v588_v11 = vrot.slane %v838_v4, 2  ;;  %v311_v14 = vld [vmem:[%s1308_s21 + $0x8] sm:$0x3]  ;;  %875 = vmatpush3.bf16.msra.mxu1 %v269_v13  ;;  %v589_v16 = vrot.slane %v839_v5, 2  ;;  %v223_v17 = vsel %vm221_vm1, %v216_v12, 0  ;;  %1010 = vset.pattern.permute.xlu0 %v1156_v30  ;;  %vm531_vm3 = vcmask 916480  }
  0x45   : > { %v1018_v15 = vld [vmem:[%s1308_s21 + $0x8] ss:$0 sps:$4 sm:$0xcc]   ;;  %886 = vmatprep.subr.bf16.mxu1 %v1153_v0  ;;  %869 = vmatpush3.bf16.msra.mxu0 %v223_v17  ;;  %v318_v21 = vsel %vm221_vm1, %v311_v14, 0  ;;  %v825_v26 = vld [vmem:[%s1465_s1 + $0x6] sm:$0x3] }
  0x46   : > { %590 = vrot.lane.b32.xlu1 %v588_v11, %s1155_s20  ;;  %v367_v19 = vrot.slane %v1018_v15, 2  ;;  %v1019_v22 = vld [vmem:[%s1308_s21 + $0x10] ss:$0 sps:$4 sm:$0xcc]   ;;  %880 = vmatprep.subr.bf16.mxu0 %v1153_v0  ;;  %v702_v28 = vld [vmem:[%s1466_s2] sm:$0xf] }
  0x47   : > { %529 = vrot.lane.b32.xlu0 %v835_v10, %s1155_s20  ;;  %877 = vmatmul.mubr.msk.bf16.vlgmr.msra.gmra.mrb[0].mxu1 %vm217_vm2, %v209_v9  ;;  %v471_v25 = vrot.slane %v1019_v22, 2  ;;  %v415_v27 = vld [vmem:[%s1308_s21 + $0x10] sm:$0x3]  ;;  %v823_v31 = vld [vmem:[%s1465_s1 + $0x4] sm:$0x3]  ;;  %s818_s29 = sshll.u32 %s1304_s8, 2 }
  0x48   : > { %v372_v23 = vsel %vm221_vm1, %v367_v19, 0  ;;  %888 = vmatprep.mubr.msk.bf16.mxu1 %vm1154_vm0, %v1153_v0  ;;  %871 = vmatmul.mubr.msk.bf16.vlgmr.msra.gmra.mrb[0].mxu0 %vm217_vm2, %v819_v18  ;;  %v422_v32 = vsel %vm221_vm1, %v415_v27, 0  ;;  %v830_v33 = vld [vmem:[%s1465_s1 + $0xa] sm:$0x3]  ;;  %v828_v34 = vld [vmem:[%s1465_s1 + $0x8] sm:$0x3] }
  0x49   : > { %881 = vmatpush3.bf16.msra.mxu0 %v318_v21  ;;  %882 = vmatprep.mubr.msk.bf16.mxu0 %vm1154_vm0, %v1153_v0  ;;  %v476_v29 = vsel %vm221_vm1, %v471_v25, 0  ;;  %v833_v42 = vld [vmem:[%s1465_s1 + $0xc] sm:$0x3]  ;;  %v837_v45 = vld [vmem:[%s1465_s1 + $0xe] sm:$0x3]  ;;  %s846_s30 = sshll.u32 %s1136_s16, 1 }
  0x4a   : > { %592 = vrot.lane.b32.xlu1 %v589_v16, %s1155_s20  ;;  %887 = vmatpush3.bf16.msra.mxu1 %v372_v23  ;;  %v841_v49 = vld [vmem:[%s1465_s1 + $0x10] sm:$0x3]  ;;  %s722_s23 = sadd.s32 %s1132_s15, %s846_s30  ;;  %s206_s10 = scalar_lea.vmem [#allocation5], %s818_s29 }
  0x4b   : > { %650 = vrot.lane.b32.xlu0 %v842_v20, %s1155_s20  ;;  %892 = vmatprep.subr.bf16.mxu0 %v1153_v0  ;;  %s847_s7 = sshll.u32 %s722_s23, 6  ;;  %s726_s11 = sshll.u32 %s206_s10, 4  ;;  %s1412_s11 = int_to_ptr.vmem [resolvable:$true] %s726_s11 }
  0x4c   : > { %898 = vmatprep.subr.bf16.mxu1 %v1153_v0  ;;  %s1410_s27 = scalar_lea.hbm %s1467_s3, %s847_s7  ;;  %s711_s15 = scalar_lea.sflag [#allocation4], %s1304_s8 }
  0x4d   : > { %s1050_s9 = scalar_lea.vmem %s1412_s11, 64  ;;  %p1476_p9 = scmp.ne.s32.totalorder %s1473_s28, 0 }
  0x4e   : > { %652 = vrot.lane.b32.xlu1 %v843_v24, %s1155_s20  ;;  %p1051_p8 = scmp.ne.s32.totalorder %s1412_s11, %s1050_s9  ;;  %s1157_s20 = smov [#allocation5]  }
  0x4f   : > { %889 = vmatmul.mubr.msk.bf16.vlgmr.msra.gmra.mrb[4].mxu1 %vm217_vm2, %v825_v26  ;;  %705 = vperm.xlu0 %1010, %v702_v28   ;;  %s1054_s24 = sshll.u32 %s1157_s20, 4  ;;  %s1055_s24 = int_to_ptr.vmem [resolvable:$false] %s1054_s24 }
  0x50   : > { %899 = vmatpush3.bf16.msra.mxu1 %v476_v29  ;;  %900 = vmatprep.mubr.msk.bf16.mxu1 %vm1154_vm0, %v1153_v0  ;;  %p1052_p12 = pnand %p1051_p8, %p1476_p9  ;;  %s1056_s26 = scalar_lea.vmem %s1055_s24, 128 }
  0x51   : > { %883 = vmatmul.mubr.msk.bf16.vlgmr.msra.gmra.mrb[4].mxu0 %vm217_vm2, %v823_v31  ;;  %910 = vmatprep.subr.bf16.mxu1 %v1153_v0  ;;  %p1057_p11 = scmp.lt.s32.totalorder %s1412_s11, %s1055_s24  ;;  %p1058_p13 = scmp.lt.s32.totalorder %s1056_s26, %s1050_s9 }
  0x52   : > { %893 = vmatpush3.bf16.msra.mxu0 %v422_v32  ;;  %894 = vmatprep.mubr.msk.bf16.mxu0 %vm1154_vm0, %v1153_v0  ;;  %p1053_p0 = pneg %p1052_p12 }
  0x53   : > { %904 = vmatprep.subr.bf16.mxu0 %v1153_v0  ;;  %p1059_p1 = por %p1058_p13, %p1057_p11 }
  0x55   : > { %p1060_p3 = pnand %p1059_p1, %p1053_p0 }
  0x57   : > { %901 = vmatmul.mubr.msk.bf16.vlgmr.msra.gmra.mrb[8].mxu1 %vm217_vm2, %v830_v33 }
  0x58   : > { %912 = vmatprep.mubr.msk.bf16.mxu1 %vm1154_vm0, %v1153_v0 }
  0x59   : > { %895 = vmatmul.mubr.msk.bf16.vlgmr.msra.gmra.mrb[8].mxu0 %vm217_vm2, %v828_v34 }
  0x5a   : > { %906 = vmatprep.mubr.msk.bf16.mxu0 %vm1154_vm0, %v1153_v0 }
  0xb5   : > { %v528_v35 = vpop.permute.xlu0 %527 }
  0xb8   : > { %v591_v36 = vpop.permute.xlu1 %590 }
  0xb9   : > { %v530_v37 = vpop.permute.xlu0 %529 }
  0xba   : > { %v532_v38 = vsel %vm531_vm3, %v528_v35, %v530_v37 }
  0xbb   : > { %v537_v39 = vsel %vm221_vm1, %v532_v38, 0 }
  0xbc   : > { %v593_v40 = vpop.permute.xlu1 %592  ;;  %905 = vmatpush3.bf16.msra.mxu0 %v537_v39 }
  0xbd   : > { %v594_v41 = vsel %vm531_vm3, %v591_v36, %v593_v40  ;;  %v651_v44 = vpop.permute.xlu0 %650  ;;  %916 = vmatprep.subr.bf16.mxu0 %v1153_v0 }
  0xbe   : > { %v599_v43 = vsel %vm221_vm1, %v594_v41, 0 }
  0xbf   : > { %911 = vmatpush3.bf16.msra.mxu1 %v599_v43  ;;  %907 = vmatmul.mubr.msk.bf16.vlgmr.msra.gmra.mrb[12].mxu0 %vm217_vm2, %v833_v42 }
  0xc0   : > { %v653_v46 = vpop.permute.xlu1 %652  ;;  %918 = vmatprep.mubr.msk.bf16.mxu0 %vm1154_vm0, %v1153_v0 }
  0xc1   : > { %v654_v47 = vsel %vm531_vm3, %v651_v44, %v653_v46 }
  0xc2   : > { %v659_v48 = vsel %vm221_vm1, %v654_v47, 0  ;;  %913 = vmatmul.mubr.msk.bf16.vlgmr.msra.gmra.mrb[12].mxu1 %vm217_vm2, %v837_v45 }
  0xc3   : > { %917 = vmatpush3.bf16.msra.mxu0 %v659_v48 }
  0xc7   : > { %919 = vmatmul.mubr.msk.bf16.vlgmr.msra.gmra.mrb[16].mxu0 %vm217_vm2, %v841_v49 }
  0xce   : > { %v706_v26 = vpop.permute.xlu0 %705 }
 0x11a   : > { %v305_v50 = vpop.f32.mrb[0].mxu1 }
 0x11b   : > { %v878_v51 = vpop.f32.mrb[1].mxu1  ;;  %v259_v52 = vpop.f32.mrb[0].mxu0 }
 0x11c   : > { %v308_v53 = vpop.f32.mrb[2].mxu1  ;;  %v872_v54 = vpop.f32.mrb[1].mxu0  ;;  %v306_v55 = vadd.f32 %v305_v50, %v259_v52 }
 0x11d   : > { %v879_v56 = vpop.f32.mrb[3].mxu1  ;;  %v262_v57 = vpop.f32.mrb[2].mxu0 }
 0x11e   : > { %v873_v58 = vpop.f32.mrb[3].mxu0 }
 0x122   : > { %v408_v59 = vpop.f32.mrb[4].mxu1 }
 0x123   : > { %v890_v60 = vpop.f32.mrb[5].mxu1 }
 0x124   : > { %v354_v61 = vpop.f32.mrb[4].mxu0  ;;  %v411_v62 = vpop.f32.mrb[6].mxu1 }
 0x125   : > { %v360_v63 = vadd.f32 %v354_v61, %v306_v55  ;;  %v884_v0 = vpop.f32.mrb[5].mxu0  ;;  %v891_v1 = vpop.f32.mrb[7].mxu1 }
 0x126   : > { %v357_v2 = vpop.f32.mrb[6].mxu0 }
 0x127   : > { %v414_v3 = vadd.f32 %v408_v59, %v360_v63  ;;  %v885_v4 = vpop.f32.mrb[7].mxu0 }
 0x12a   : > { %v512_v5 = vpop.f32.mrb[8].mxu1 }
 0x12b   : > { %v902_v6 = vpop.f32.mrb[9].mxu1 }
 0x12c   : > { %v458_v7 = vpop.f32.mrb[8].mxu0  ;;  %v515_v8 = vpop.f32.mrb[10].mxu1 }
 0x12d   : > { %v464_v9 = vadd.f32 %v458_v7, %v414_v3  ;;  %v896_v10 = vpop.f32.mrb[9].mxu0  ;;  %v903_v11 = vpop.f32.mrb[11].mxu1 }
 0x12e   : > { %v461_v12 = vpop.f32.mrb[10].mxu0 }
 0x12f   : > { %v518_v13 = vadd.f32 %v512_v5, %v464_v9  ;;  %v897_v14 = vpop.f32.mrb[11].mxu0 }
 0x192   : > { %v573_v15 = vpop.f32.mrb[12].mxu0 }
 0x193   : > { %v579_v16 = vadd.f32 %v573_v15, %v518_v13  ;;  %v908_v17 = vpop.f32.mrb[13].mxu0 }
 0x194   : > { %v576_v19 = vpop.f32.mrb[14].mxu0 }
 0x195   : > { %v635_v18 = vpop.f32.mrb[12].mxu1  ;;  %v909_v21 = vpop.f32.mrb[15].mxu0 }
 0x196   : > { %v641_v20 = vadd.f32 %v635_v18, %v579_v16  ;;  %v914_v22 = vpop.f32.mrb[13].mxu1 }
 0x197   : > { %v638_v23 = vpop.f32.mrb[14].mxu1 }
 0x198   : > { %v915_v24 = vpop.f32.mrb[15].mxu1 }
 0x19a   : > { %v695_v25 = vpop.f32.mrb[16].mxu0 }
 0x19b   : > { %v701_v27 = vadd.f32 %v695_v25, %v641_v20  ;;  %v920_v28 = vpop.f32.mrb[17].mxu0 }
 0x19c   : > { %v698_v29 = vpop.f32.mrb[18].mxu0 }
 0x19d   : > { %v708_v30 = vadd.f32 %v706_v26, %v701_v27  ;;  %v921_v31 = vpop.f32.mrb[19].mxu0 }
 0x19f   : > { %709 = vst [vmem:[%s206_s10] sm:$0xf] %v708_v30 }
 0x1a0   : > { %1063 = shalt.err (!%p1060_p3)
}
 0x1a1   : > { %s1064_s8 = scalar_lea.hbm %s1410_s27, 64  ;;  %s1068_s29 = scalar_lea.hbm %s1467_s3, 256 }
 0x1a2   : > { %p1065_p5 = scmp.ne.s32.totalorder %s1410_s27, %s1064_s8  ;;  %p1069_p2 = scmp.lt.u32.totalorder %s1410_s27, %s1467_s3 }
 0x1a3   : > { %p1070_p4 = scmp.lt.u32.totalorder %s1068_s29, %s1064_s8  ;;  %p1072_p8 = scmp.lt.u32.totalorder %s1064_s8, %s1410_s27 }
 0x1a4   : > { %p1066_p6 = pnand %p1065_p5, %p1476_p9 }
 0x1a5   : > { %p1071_p10 = por %p1070_p4, %p1069_p2 }
 0x1a6   : > { %p1067_p7 = pneg %p1066_p6 }
 0x1a7   : > { %p1073_p12 = por %p1072_p8, %p1071_p10 }
 0x1a9   : > { %p1074_p0 = pnand %p1073_p12, %p1067_p7 }
 0x1ab   : > { %1077 = shalt.err (!%p1074_p0)
}
 0x1ac   : > { %928 = dma.vmem_to_hbm [thread:$0]  (%p1476_p9), %s1412_s11, 64, %s1410_s27, %s711_s15  }
 0x1ad PF: > { %p939_p11 = scmp.ge.s32.totalorder %s1148_s19, 2  ;;  %s738_s7 = sand.u32 1, %s1120_s12  }
 0x1ae   : > { %p1477_p13 = scmp.ne.s32.totalorder %s1474_s4, 0  ;;  %s739_s10 = scalar_lea.sflag [#allocation4], %s738_s7 }
 0x1b0   : > { %p935_p1 = pnand %p939_p11, %p1477_p13 }
 0x1b2   : > { %1115 = dma.done.wait (!%p935_p1), %s739_s10, 64  }
 0x1b3   : > { %1117 = vsyncadd (!%p935_p1), %s739_s10, 4294967232  ;;  %s19_s19 = sadd.s32 1, %s1148_s19   ;;  %s1478_s28 = sld [smem:[#allocation8_spill]] }
 0x1b4   : > { %p16_p3 = scmp.ge.s32.totalorder %s19_s19, 6   ;;  %s1479_s12 = smov %s1124_s13 }
 0x1b5   : > { %s1480_s13 = smov %s1128_s14  ;;  %s1481_s14 = smov %s1256_s6 }
 0x1b6   : > { %s1482_s15 = smov %s1140_s17  ;;  %s1483_s16 = smov %s1144_s18 }
 0x1b7   : > { %s1484_s17 = smov %s1487_s22  ;;  %18 = sbr.rel (!%p16_p3) target bundleno = 7 (0x7), region = 85 }
 0x1b9   : > { %s1485_s18 = smov %s1478_s28 }
 0x1be   :  { %744 = vsyncpa [#allocation3], 1 }
 0x1bf   :  { %746 = vsyncpa [#allocation3 + $0x1], 1 }
 0x1c0   :  { %747 = vsyncpa [#allocation4], 1 }
 0x1c1   :  { %749 = vsyncpa [#allocation4 + $0x1], 1 }

</bundles_post_ra>
